<compile_context>
chip_gen: v6e
topology: v6e:2x2x1
jax: 0.10.0
libtpu: 0.0.40
codegen_flags: <defaults>
</compile_context>

<pallas_src>
import jax
import jax.numpy as jnp
from jax.experimental import pallas as pl
from jax.experimental.pallas import tpu as pltpu


def _round_up(x, m):
    return ((x + m - 1) // m) * m


def _vmem_capacity_bytes():
    """Physical VMEM of the current generation; conservative v7x fallback."""
    try:
        return int(pltpu.get_tpu_info().vmem_capacity_bytes)
    except Exception:
        return 64 * 1024 * 1024


# --------------------------------------------------------------------------
# Kernels
# --------------------------------------------------------------------------

def _ffn_kernel_resident(x_ref, w1_ref, b1_ref, w2_ref, b2_ref, o_ref):
    """Both weight matrices fully resident; 1-D row grid, no reduction axis."""
    x = x_ref[...].astype(w1_ref.dtype)                       # per-tile cast
    h = jnp.dot(x, w1_ref[...], preferred_element_type=jnp.float32)
    h = jnp.maximum(h + b1_ref[...], 0.0)                      # f32 bias + ReLU
    y = jnp.dot(h.astype(w2_ref.dtype), w2_ref[...],
                preferred_element_type=jnp.float32)
    o_ref[...] = (y + b2_ref[...]).astype(o_ref.dtype)


def _ffn_kernel_reduce_f32(x_ref, w1_ref, b1_ref, w2_ref, b2_ref, o_ref):
    """d_ff reduction axis; f32 output accumulated directly in o_ref."""
    k = pl.program_id(1)

    @pl.when(k == 0)
    def _init():
        o_ref[...] = jnp.broadcast_to(b2_ref[...], o_ref.shape)

    x = x_ref[...].astype(w1_ref.dtype)
    h = jnp.dot(x, w1_ref[...], preferred_element_type=jnp.float32)
    h = jnp.maximum(h + b1_ref[...], 0.0)
    o_ref[...] += jnp.dot(h.astype(w2_ref.dtype), w2_ref[...],
                          preferred_element_type=jnp.float32)


def _ffn_kernel_reduce_acc(x_ref, w1_ref, b1_ref, w2_ref, b2_ref, o_ref,
                           acc_ref):
    """d_ff reduction axis; f32 VMEM accumulator for non-f32 output dtypes."""
    k = pl.program_id(1)

    @pl.when(k == 0)
    def _init():
        acc_ref[...] = jnp.broadcast_to(b2_ref[...], acc_ref.shape)

    x = x_ref[...].astype(w1_ref.dtype)
    h = jnp.dot(x, w1_ref[...], preferred_element_type=jnp.float32)
    h = jnp.maximum(h + b1_ref[...], 0.0)
    acc_ref[...] += jnp.dot(h.astype(w2_ref.dtype), w2_ref[...],
                            preferred_element_type=jnp.float32)

    @pl.when(k == pl.num_programs(1) - 1)
    def _finalize():
        o_ref[...] = acc_ref[...].astype(o_ref.dtype)


# --------------------------------------------------------------------------
# VMEM footprint accounting & tile selection
# --------------------------------------------------------------------------

def _resident_footprint(rt, d_model, d_ff, xb, wb, ob):
    f = 2 * rt * d_model * xb                 # x block (double-buffered)
    f += 2 * d_model * d_ff * wb              # W1 (counted x2, conservative)
    f += 2 * d_ff * d_model * wb              # W2
    f += 2 * rt * d_model * ob                # output block
    f += 2 * (d_ff + d_model) * 4             # f32 biases
    f += rt * d_ff * (4 + wb)                 # hidden h (f32) + its bf16 cast
    f += rt * d_model * wb                    # bf16 cast of x tile
    return f


def _reduce_footprint(rt, ft, d_model, xb, wb, ob, use_acc):
    f = 2 * rt * d_model * xb                 # x block
    f += 2 * d_model * ft * wb                # W1 slice
    f += 2 * ft * d_model * wb                # W2 slice
    f += 2 * rt * d_model * ob                # output block
    f += 2 * (ft + d_model) * 4               # f32 biases
    f += rt * ft * (4 + wb)                   # hidden h (f32) + its bf16 cast
    f += rt * d_model * wb                    # bf16 cast of x tile
    if use_acc:
        f += rt * d_model * 4                 # f32 accumulator scratch
    return f


def _pick_row_tile(n_rows):
    """>=256-row tiles; prefer an even tile count (v7x dual-TC) with <=25% pad."""
    n8 = _round_up(n_rows, 8)
    if n8 <= 256:
        return n8                              # too small to split usefully
    cands = []
    for rt in (512, 256):
        n_tiles = pl.cdiv(n8, rt)
        pad = n_tiles * rt - n8
        if n_tiles >= 2 and pad * 4 <= n8:     # at most ~25% padded rows
            cands.append((n_tiles % 2, -rt, rt))   # even count first, then big
    if not cands:
        return n8 if n8 <= 1024 else 512
    cands.sort()
    return cands[0][2]


def _choose_config(n_rows, d_model, d_ff, xb, wb, ob, use_acc, budget,
                   row_tile=None, ff_tile=None, force_mode=None):
    rt = _round_up(row_tile, 8) if row_tile is not None else _pick_row_tile(n_rows)

    # Path A: keep W1+W2 fully resident when they fit in ~1/3 of the budget.
    weights_bytes = 2 * d_model * d_ff * wb
    want_resident = (force_mode == "resident") or (
        force_mode is None and ff_tile is None and weights_bytes <= budget // 3)
    if want_resident:
        r = rt
        while r > 8 and _resident_footprint(r, d_model, d_ff, xb, wb, ob) > budget:
            r = _round_up(max(8, r // 2), 8)
        fp = _resident_footprint(r, d_model, d_ff, xb, wb, ob)
        if fp <= budget:
            return "resident", r, d_ff, fp

    # Path B: stream the weights, reduce over d_ff in ff_tile-wide slices.
    if ff_tile is not None:
        ff_cands = [ff_tile]
    else:
        ff_cands = [t for t in (2048, 1024, 512, 256) if d_ff % t == 0]
        if not ff_cands:
            ff_cands = [128] if d_ff % 128 == 0 else [d_ff]
    r = rt
    while True:
        for ft in ff_cands:
            fp = _reduce_footprint(r, ft, d_model, xb, wb, ob, use_acc)
            if fp <= budget:
                return "reduce", r, ft, fp
        if r <= 8:
            ft = ff_cands[-1]
            return "reduce", r, ft, _reduce_footprint(r, ft, d_model, xb, wb,
                                                      ob, use_acc)
        r = _round_up(max(8, r // 2), 8)


# --------------------------------------------------------------------------
# Wrapper
# --------------------------------------------------------------------------

def positionwise_feed_forward(x, w1, b1, w2, b2, *,
                              compute_dtype=jnp.bfloat16,
                              row_tile=None, ff_tile=None, force_mode=None):
    """x: (batch, seq, d_model) -> (batch, seq, d_model). Eval-mode FFN."""
    batch, seq, d_model = x.shape
    d_ff = w1.shape[1]
    out_dtype = x.dtype
    n_rows = batch * seq

    # Zero-pad a ragged d_ff up to a 256-multiple (exact no-op: relu(0)=0 and
    # the padded W2 rows are zero).
    if d_ff % 128 != 0:
        dp = _round_up(d_ff, 256)
        w1 = jnp.pad(w1, ((0, 0), (0, dp - d_ff)))
        b1 = jnp.pad(b1, (0, dp - d_ff))
        w2 = jnp.pad(w2, ((0, dp - d_ff), (0, 0)))
        d_ff = dp
    if ff_tile is not None:
        assert d_ff % ff_tile == 0, "ff_tile must divide (padded) d_ff"

    # Weights go through the MXU in compute_dtype; cast only when necessary.
    w1c = w1 if w1.dtype == compute_dtype else w1.astype(compute_dtype)
    w2c = w2 if w2.dtype == compute_dtype else w2.astype(compute_dtype)
    b1_2d = b1.reshape(1, d_ff).astype(jnp.float32)
    b2_2d = b2.reshape(1, d_model).astype(jnp.float32)

    xb = jnp.dtype(x.dtype).itemsize
    wb = jnp.dtype(compute_dtype).itemsize
    ob = jnp.dtype(out_dtype).itemsize
    use_acc = out_dtype != jnp.float32        # f32 out accumulates in o_ref

    capacity = _vmem_capacity_bytes()
    budget = (capacity * 3) // 4              # leave headroom below physical

    mode, rt, ft, footprint = _choose_config(
        n_rows, d_model, d_ff, xb, wb, ob, use_acc, budget,
        row_tile=row_tile, ff_tile=ff_tile, force_mode=force_mode)

    # Explicit VMEM limit derived from the actual block footprint.
    vmem_limit = int(min(capacity,
                         max(32 << 20, footprint + max(footprint // 4, 4 << 20))))

    # x is streamed in its original dtype (cast per-tile in the kernel);
    # only pad rows when the row count does not divide the row tile.
    n_rows_p = _round_up(n_rows, rt)
    x2d = x.reshape(n_rows, d_model)
    if n_rows_p != n_rows:
        x2d = jnp.pad(x2d, ((0, n_rows_p - n_rows), (0, 0)))
    grid0 = n_rows_p // rt

    weight_passes = 1 if mode == "resident" else grid0
    cost = pl.CostEstimate(
        flops=int(4 * n_rows_p * d_model * d_ff),
        transcendentals=0,
        bytes_accessed=int(n_rows_p * d_model * xb
                           + weight_passes * 2 * d_model * d_ff * wb
                           + n_rows_p * d_model * ob),
    )

    if mode == "resident":
        out2d = pl.pallas_call(
            _ffn_kernel_resident,
            out_shape=jax.ShapeDtypeStruct((n_rows_p, d_model), out_dtype),
            grid_spec=pltpu.PrefetchScalarGridSpec(
                num_scalar_prefetch=0,
                grid=(grid0,),
                in_specs=[
                    pl.BlockSpec((rt, d_model), lambda i: (i, 0)),     # x rows
                    pl.BlockSpec((d_model, d_ff), lambda i: (0, 0)),   # W1 (resident)
                    pl.BlockSpec((1, d_ff), lambda i: (0, 0)),         # b1
                    pl.BlockSpec((d_ff, d_model), lambda i: (0, 0)),   # W2 (resident)
                    pl.BlockSpec((1, d_model), lambda i: (0, 0)),      # b2
                ],
                out_specs=pl.BlockSpec((rt, d_model), lambda i: (i, 0)),
            ),
            compiler_params=pltpu.CompilerParams(
                dimension_semantics=("parallel",),
                vmem_limit_bytes=vmem_limit),
            cost_estimate=cost,
        )(x2d, w1c, b1_2d, w2c, b2_2d)
    else:
        n_k = d_ff // ft
        kernel = _ffn_kernel_reduce_acc if use_acc else _ffn_kernel_reduce_f32
        scratch = [pltpu.VMEM((rt, d_model), jnp.float32)] if use_acc else []
        out2d = pl.pallas_call(
            kernel,
            out_shape=jax.ShapeDtypeStruct((n_rows_p, d_model), out_dtype),
            grid_spec=pltpu.PrefetchScalarGridSpec(
                num_scalar_prefetch=0,
                grid=(grid0, n_k),
                in_specs=[
                    pl.BlockSpec((rt, d_model), lambda i, k: (i, 0)),   # x rows
                    pl.BlockSpec((d_model, ft), lambda i, k: (0, k)),   # W1 slice
                    pl.BlockSpec((1, ft), lambda i, k: (0, k)),         # b1 slice
                    pl.BlockSpec((ft, d_model), lambda i, k: (k, 0)),   # W2 slice
                    pl.BlockSpec((1, d_model), lambda i, k: (0, 0)),    # b2
                ],
                out_specs=pl.BlockSpec((rt, d_model), lambda i, k: (i, 0)),
                scratch_shapes=scratch,
            ),
            compiler_params=pltpu.CompilerParams(
                dimension_semantics=("parallel", "arbitrary"),
                vmem_limit_bytes=vmem_limit),
            cost_estimate=cost,
        )(x2d, w1c, b1_2d, w2c, b2_2d)

    if n_rows_p != n_rows:
        out2d = out2d[:n_rows]
    return out2d.reshape(batch, seq, d_model)


if __name__ == "__main__":
    # Small shapes; d_model multiple of 128 keeps the output lane-dense,
    # d_ff = 256 exercises both the resident and the reduction paths.
    batch, seq, d_model, d_ff = 2, 8, 128, 256

    key = jax.random.PRNGKey(0)
    kx, k1, kb1, k2, kb2 = jax.random.split(key, 5)

    x = jax.random.normal(kx, (batch, seq, d_model), dtype=jnp.float32)

    # Deterministic param init (PyTorch nn.Linear-style uniform bounds),
    # stored as (in_dim, out_dim) so the kernel computes x @ W + b.
    bound1 = 1.0 / (d_model ** 0.5)
    w1 = jax.random.uniform(k1, (d_model, d_ff), jnp.float32, -bound1, bound1)
    b1 = jax.random.uniform(kb1, (d_ff,), jnp.float32, -bound1, bound1)
    bound2 = 1.0 / (d_ff ** 0.5)
    w2 = jax.random.uniform(k2, (d_ff, d_model), jnp.float32, -bound2, bound2)
    b2 = jax.random.uniform(kb2, (d_model,), jnp.float32, -bound2, bound2)

    ref_f32 = jnp.maximum(x @ w1 + b1, 0.0) @ w2 + b2

    # Path A (auto-selected at these shapes): weights fully resident in VMEM.
    y_res = jax.block_until_ready(positionwise_feed_forward(x, w1, b1, w2, b2))
    assert y_res.shape == (batch, seq, d_model)
    assert jnp.allclose(y_res, ref_f32, atol=5e-2, rtol=5e-2), \
        "resident path mismatch vs f32 reference"

    # Path B: streamed weights with a d_ff reduction axis (2 k-steps),
    # f32 output accumulated directly in the resident output block.
    y_red = jax.block_until_ready(
        positionwise_feed_forward(x, w1, b1, w2, b2,
                                  force_mode="reduce", ff_tile=128))
    assert jnp.allclose(y_red, ref_f32, atol=5e-2, rtol=5e-2), \
        "reduction path mismatch vs f32 reference"

    # Path B with a bf16 output dtype (exercises the f32 accumulator scratch).
    y_bf = jax.block_until_ready(
        positionwise_feed_forward(x.astype(jnp.bfloat16), w1, b1, w2, b2,
                                  force_mode="reduce", ff_tile=128))
    assert y_bf.dtype == jnp.bfloat16
    assert jnp.allclose(y_bf.astype(jnp.float32), ref_f32, atol=1e-1, rtol=1e-1), \
        "bf16-output path mismatch vs f32 reference"

    print("KERNEL_OK")
</pallas_src>

<mosaic_0001>
module attributes {stable_mosaic.version = 11 : i64} {
  func.func @_ffn_kernel_resident(%arg0: i32, %arg1: memref<16x128xf32, #tpu.memory_space<vmem>>, %arg2: memref<128x256xbf16, #tpu.memory_space<vmem>>, %arg3: memref<1x256xf32, #tpu.memory_space<vmem>>, %arg4: memref<256x128xbf16, #tpu.memory_space<vmem>>, %arg5: memref<1x128xf32, #tpu.memory_space<vmem>>, %arg6: memref<16x128xf32, #tpu.memory_space<vmem>>) attributes {dimension_semantics = [#tpu.dimension_semantics<parallel>], iteration_bounds = array<i64: 1>, scalar_prefetch = 0 : i64, scratch_operands = 0 : i64, tpu.core_type = #tpu.core_type<tc>, window_params = [{transform_indices = @transform_0, window_bounds = array<i64: 16, 128>}, {pipeline_mode = #tpu.pipeline_mode<synchronous>, transform_indices = @transform_1, window_bounds = array<i64: 128, 256>}, {pipeline_mode = #tpu.pipeline_mode<synchronous>, transform_indices = @transform_2, window_bounds = array<i64: 1, 256>}, {pipeline_mode = #tpu.pipeline_mode<synchronous>, transform_indices = @transform_3, window_bounds = array<i64: 256, 128>}, {pipeline_mode = #tpu.pipeline_mode<synchronous>, transform_indices = @transform_4, window_bounds = array<i64: 1, 128>}, {transform_indices = @transform_5, window_bounds = array<i64: 16, 128>}]} {
    %c0 = arith.constant 0 : index
    %c0_0 = arith.constant 0 : index
    %0 = vector.load %arg1[%c0, %c0_0] : memref<16x128xf32, #tpu.memory_space<vmem>>, vector<16x128xf32>
    %1 = arith.truncf %0 : vector<16x128xf32> to vector<16x128xbf16>
    %c0_1 = arith.constant 0 : index
    %c0_2 = arith.constant 0 : index
    %2 = vector.load %arg2[%c0_1, %c0_2] : memref<128x256xbf16, #tpu.memory_space<vmem>>, vector<128x256xbf16>
    %cst = arith.constant dense<0.000000e+00> : vector<16x256xf32>
    %3 = tpu.matmul %1, %2, %cst {dimension_numbers = #tpu.dot_dimension_numbers<[1], [0], [0], [1], [0, 0, 1, 1], [], []>} : vector<16x128xbf16>, vector<128x256xbf16>, vector<16x256xf32> -> vector<16x256xf32>
    %c0_3 = arith.constant 0 : index
    %c0_4 = arith.constant 0 : index
    %4 = vector.load %arg3[%c0_3, %c0_4] : memref<1x256xf32, #tpu.memory_space<vmem>>, vector<1x256xf32>
    %5 = vector.broadcast %4 : vector<1x256xf32> to vector<16x256xf32>
    %6 = arith.addf %3, %5 : vector<16x256xf32>
    %cst_5 = arith.constant 0.000000e+00 : f32
    %7 = vector.broadcast %cst_5 : f32 to vector<16x256xf32>
    %8 = arith.maximumf %6, %7 : vector<16x256xf32>
    %9 = arith.truncf %8 : vector<16x256xf32> to vector<16x256xbf16>
    %c0_6 = arith.constant 0 : index
    %c0_7 = arith.constant 0 : index
    %10 = vector.load %arg4[%c0_6, %c0_7] : memref<256x128xbf16, #tpu.memory_space<vmem>>, vector<256x128xbf16>
    %cst_8 = arith.constant dense<0.000000e+00> : vector<16x128xf32>
    %11 = tpu.matmul %9, %10, %cst_8 {dimension_numbers = #tpu.dot_dimension_numbers<[1], [0], [0], [1], [0, 0, 1, 1], [], []>} : vector<16x256xbf16>, vector<256x128xbf16>, vector<16x128xf32> -> vector<16x128xf32>
    %c0_9 = arith.constant 0 : index
    %c0_10 = arith.constant 0 : index
    %12 = vector.load %arg5[%c0_9, %c0_10] : memref<1x128xf32, #tpu.memory_space<vmem>>, vector<1x128xf32>
    %13 = vector.broadcast %12 : vector<1x128xf32> to vector<16x128xf32>
    %14 = arith.addf %11, %13 : vector<16x128xf32>
    %c0_11 = arith.constant 0 : index
    %c0_12 = arith.constant 0 : index
    %15 = vector.load %arg6[%c0_11, %c0_12] : memref<16x128xf32, #tpu.memory_space<vmem>>, vector<16x128xf32>
    tpu.vector_store %arg6[%c0_11, %c0_12], %14 {strides = array<i32>} : memref<16x128xf32, #tpu.memory_space<vmem>>, vector<16x128xf32>,
    return
  }
  func.func @transform_0(%arg0: i32) -> (i32, i32) {
    %c0_i32 = arith.constant 0 : i32
    %c0_i32_0 = arith.constant 0 : i32
    return %arg0, %c0_i32 : i32, i32
  }
  func.func @transform_1(%arg0: i32) -> (i32, i32) {
    %c0_i32 = arith.constant 0 : i32
    %c0_i32_0 = arith.constant 0 : i32
    %c0_i32_1 = arith.constant 0 : i32
    return %c0_i32, %c0_i32_0 : i32, i32
  }
  func.func @transform_2(%arg0: i32) -> (i32, i32) {
    %c0_i32 = arith.constant 0 : i32
    %c0_i32_0 = arith.constant 0 : i32
    %c0_i32_1 = arith.constant 0 : i32
    return %c0_i32, %c0_i32_0 : i32, i32
  }
  func.func @transform_3(%arg0: i32) -> (i32, i32) {
    %c0_i32 = arith.constant 0 : i32
    %c0_i32_0 = arith.constant 0 : i32
    %c0_i32_1 = arith.constant 0 : i32
    return %c0_i32, %c0_i32_0 : i32, i32
  }
  func.func @transform_4(%arg0: i32) -> (i32, i32) {
    %c0_i32 = arith.constant 0 : i32
    %c0_i32_0 = arith.constant 0 : i32
    %c0_i32_1 = arith.constant 0 : i32
    return %c0_i32, %c0_i32_0 : i32, i32
  }
  func.func @transform_5(%arg0: i32) -> (i32, i32) {
    %c0_i32 = arith.constant 0 : i32
    %c0_i32_0 = arith.constant 0 : i32
    return %arg0, %c0_i32 : i32, i32
  }
}

</mosaic_0001>

<bundles_post_ra>
// kernel: tpu_custom_call.1
= control target key start
LH: loop header
LB: loop body
LE: loop exit
PB: predicated region body
PF: predicated region fallthrough
CT: control target
= control target key end

     0   :  { %10 = vsyncpa [#allocation3], 0  ;;  %s675_s0 = inlined_call_operand.hbm [shape: f32[16,128], index: 0, kind: input, shape index: {}]   ;;  %s676_s1 = inlined_call_operand.hbm [shape: bf16[128,256], index: 1, kind: input, shape index: {}]   ;;  %s677_s2 = inlined_call_operand.vmem [shape: f32[1,256], index: 2, kind: input, shape index: {}]   ;;  %s678_s3 = inlined_call_operand.hbm [shape: bf16[256,128], index: 3, kind: input, shape index: {}]   ;;  %s679_s4 = inlined_call_operand.vmem [shape: f32[1,128], index: 4, kind: input, shape index: {}]   ;;  %s680_s5 = inlined_call_operand.hbm [shape: f32[16,128], index: 5, kind: output, shape index: {}]  }
   0x1   :  { %11 = vsyncpa [#allocation6], 0 }
   0x2   :  { %12 = vsyncpa [#allocation4], 0  ;;  %s609_s18 = smov [#allocation5]   ;;  %s610_s20 = smov [#allocation2]  }
   0x3   :  { %s30_s19 = sshll.u32 %s609_s18, 4  ;;  %s18_s21 = sshll.u32 %s610_s20, 4  ;;  %s31_s19 = int_to_ptr.vmem [resolvable:$true] %s30_s19  ;;  %s19_s21 = int_to_ptr.vmem [resolvable:$true] %s18_s21 }
   0x4   :  { %s531_s22 = scalar_lea.vmem %s31_s19, 2048  ;;  %p536_p1 = scmp.lt.s32.totalorder %s31_s19, %s31_s19 }
   0x5   :  { %p532_p0 = scmp.ne.s32.totalorder %s31_s19, %s531_s22  ;;  %p537_p2 = scmp.lt.s32.totalorder %s531_s22, %s531_s22 }
   0x7   :  { %p538_p3 = por %p537_p2, %p536_p1 }
   0x9   :  { %p539_p4 = pnand %p538_p3, %p532_p0 }
   0xb   :  { %542 = shalt.err (!%p539_p4)
}
   0xc   :  { %s611_s23 = smov 128   ;;  %s612_s24 = smov 8  }
   0xd   :  { %36 = dma.hbm_to_vmem [thread:$0]  %s676_s1, 2048, %s31_s19, [#allocation6], %s611_s23, %s611_s23, %s612_s24  }
   0xe   :  { %s551_s27 = scalar_lea.vmem %s19_s21, 256  ;;  %p556_p6 = scmp.lt.s32.totalorder %s19_s21, %s19_s21 }
   0xf   :  { %p552_p5 = scmp.ne.s32.totalorder %s19_s21, %s551_s27  ;;  %p557_p7 = scmp.lt.s32.totalorder %s551_s27, %s551_s27 }
  0x11   :  { %p558_p8 = por %p557_p7, %p556_p6 }
  0x13   :  { %p559_p9 = pnand %p558_p8, %p552_p5 }
  0x15   :  { %562 = shalt.err (!%p559_p9)
}
  0x16   :  { %24 = dma.hbm_to_vmem [thread:$0]  %s675_s0, 256, %s19_s21, [#allocation3], %s611_s23, %s611_s23, %s612_s24  }
  0x17   :  { %s613_s30 = smov [#allocation7]  }
  0x18   :  { %s44_s6 = sshll.u32 %s613_s30, 4  ;;  %s45_s6 = int_to_ptr.vmem [resolvable:$true] %s44_s6 }
  0x19   :  { %s571_s7 = scalar_lea.vmem %s45_s6, 2048  ;;  %p576_p11 = scmp.lt.s32.totalorder %s45_s6, %s45_s6 }
  0x1a   :  { %p572_p10 = scmp.ne.s32.totalorder %s45_s6, %s571_s7  ;;  %p577_p12 = scmp.lt.s32.totalorder %s571_s7, %s571_s7 }
  0x1c   :  { %p578_p13 = por %p577_p12, %p576_p11 }
  0x1e   :  { %p579_p0 = pnand %p578_p13, %p572_p10 }
  0x20   :  { %582 = shalt.err (!%p579_p0)
}
  0x21   :  { %s614_s1 = smov 64   ;;  %s615_s8 = smov 4  }
  0x22   :  { %50 = dma.hbm_to_vmem [thread:$0]  %s678_s3, 2048, %s45_s6, [#allocation6], %s614_s1, %s614_s1, %s615_s8  }
  0x23   :  { %603 = dma.done.wait [#allocation3], 256  }
  0x24   :  { %604 = vsyncadd [#allocation3], 4294967040 }
  0x25   :  { %605 = dma.done.wait [#allocation6], 4096  }
  0x26   :  { %606 = vsyncadd [#allocation6], 4294963200  ;;  %v616_v0 = vmov 0   ;;  %v483_v1 = vld [vmem:[#allocation5 + $0x74] ss:$8 sps:$4 sm:$0xff]   ;;  %v511_v16 = vld [vmem:[#allocation7 + $0x68] sm:$0xff]   ;;  %v84_v36 = vlaneseq }
  0x27   :  { %206 = vmatprep.mubr.bf16.mxu0 %v616_v0  ;;  %v485_v2 = vld [vmem:[#allocation5 + $0x70] ss:$8 sps:$4 sm:$0xff]   ;;  %174 = vmatprep.subr.bf16.mxu0 %v483_v1  ;;  %v486_v3 = vld [vmem:[#allocation5 + $0x64] ss:$8 sps:$4 sm:$0xff]   ;;  %v488_v4 = vld [vmem:[#allocation5 + $0x60] ss:$8 sps:$4 sm:$0xff]  }
  0x28   :  { %175 = vmatpush1.bf16.msra.mxu0 %v485_v2  ;;  %v489_v5 = vld [vmem:[#allocation5 + $0x54] ss:$8 sps:$4 sm:$0xff]   ;;  %v491_v6 = vld [vmem:[#allocation5 + $0x50] ss:$8 sps:$4 sm:$0xff]   ;;  %v492_v7 = vld [vmem:[#allocation5 + $0x44] ss:$8 sps:$4 sm:$0xff]  }
  0x29   :  { %176 = vmatprep.subr.bf16.mxu0 %v486_v3  ;;  %v494_v8 = vld [vmem:[#allocation5 + $0x40] ss:$8 sps:$4 sm:$0xff]   ;;  %v495_v9 = vld [vmem:[#allocation5 + $0x34] ss:$8 sps:$4 sm:$0xff]   ;;  %v497_v11 = vld [vmem:[#allocation5 + $0x30] ss:$8 sps:$4 sm:$0xff]  }
  0x2a   :  { %v507_v10 = vld [vmem:[#allocation7 + $0x78] sm:$0xff]   ;;  %v498_v13 = vld [vmem:[#allocation5 + $0x24] ss:$8 sps:$4 sm:$0xff]   ;;  %v509_v14 = vld [vmem:[#allocation7 + $0x70] sm:$0xff]   ;;  %v85_v37 = vshrl.u32 %v84_v36, 7  ;;  %s617_s12 = smov [#allocation8]  }
  0x2b   :  { %v508_v12 = vld [vmem:[#allocation7 + $0x38] sm:$0xff]   ;;  %452 = vmatprep.subr.bf16.mxu1 %v507_v10  ;;  %v510_v15 = vld [vmem:[#allocation7 + $0x30] sm:$0xff]   ;;  %v500_v17 = vld [vmem:[#allocation5 + $0x20] ss:$8 sps:$4 sm:$0xff]   ;;  %s406_s13 = sshll.u32 %s617_s12, 4  ;;  %s407_s13 = int_to_ptr.vmem [resolvable:$true] %s406_s13 }
  0x2c   :  { %177 = vmatpush1.bf16.msra.mxu0 %v488_v4  ;;  %453 = vmatpush3.bf16.msra.mxu1 %v508_v12  ;;  %v501_v18 = vld [vmem:[#allocation5 + $0x14] ss:$8 sps:$4 sm:$0xff]   ;;  %v512_v19 = vld [vmem:[#allocation7 + $0x28] sm:$0xff]   ;;  %v513_v20 = vld [vmem:[#allocation7 + $0x60] sm:$0xff]   ;;  %v90_v38 = vsub.s32 1, %v85_v37  ;;  %v86_v39 = vsub.s32 0, %v85_v37  ;;  %p588_p2 = scmp.lt.s32.totalorder %s407_s13, %s407_s13 }
  0x2d   :  { %178 = vmatprep.subr.bf16.mxu0 %v489_v5  ;;  %454 = vmatprep.subr.bf16.mxu1 %v509_v14  ;;  %v503_v21 = vld [vmem:[#allocation5 + $0x10] ss:$8 sps:$4 sm:$0xff]   ;;  %v514_v22 = vld [vmem:[#allocation7 + $0x20] sm:$0xff]   ;;  %v519_v32 = vld [vmem:[#allocation7 + $0x48] sm:$0xff]   ;;  %s583_s14 = scalar_lea.vmem %s407_s13, 256 }
  0x2e   :  { %v504_v23 = vld [vmem:[#allocation5 + $0x4] ss:$8 sps:$4 sm:$0xff]   ;;  %v515_v24 = vld [vmem:[#allocation7 + $0x58] sm:$0xff]   ;;  %v506_v25 = vld [vmem:[#allocation5] ss:$8 sps:$4 sm:$0xff]   ;;  %p584_p1 = scmp.ne.s32.totalorder %s407_s13, %s583_s14  ;;  %p589_p3 = scmp.lt.s32.totalorder %s583_s14, %s583_s14 }
  0x2f   :  { %v63_v26 = vld [vmem:[#allocation2] sm:$0xff]  ;;  %v64_v27 = vld [vmem:[#allocation2 + $0x8] sm:$0xff]  ;;  %v520_v33 = vld [vmem:[#allocation7 + $0x8] sm:$0xff]  }
  0x30   :  { %179 = vmatpush1.bf16.msra.mxu0 %v491_v6  ;;  %455 = vmatpush3.bf16.msra.mxu1 %v510_v15  ;;  %v516_v28 = vld [vmem:[#allocation7 + $0x18] sm:$0xff]   ;;  %v65_v29 = vpack.c.bf16 %v64_v27, %v63_v26  ;;  %v517_v30 = vld [vmem:[#allocation7 + $0x50] sm:$0xff]   ;;  %v521_v34 = vld [vmem:[#allocation7 + $0x40] sm:$0xff]   ;;  %p590_p4 = por %p589_p3, %p588_p2 }
  0x31   :  { %180 = vmatprep.subr.bf16.mxu0 %v492_v7  ;;  %456 = vmatprep.subr.bf16.mxu1 %v511_v16  ;;  %v518_v31 = vld [vmem:[#allocation7 + $0x10] sm:$0xff]   ;;  %v522_v35 = vld [vmem:[#allocation7] sm:$0xff]  }
  0x32   :  { %v82_v40 = vld [vmem:[%s677_s2] sm:$0x3]  ;;  %p591_p5 = pnand %p590_p4, %p584_p1 }
  0x33   :  { %v91_v42 = vrot.slane %v82_v40, %v90_v38  ;;  %v87_v43 = vrot.slane %v82_v40, %v86_v39  ;;  %v435_v58 = vld [vmem:[%s679_s4] ss:$0 sm:$0xff] }
  0x34   :  { %181 = vmatpush1.bf16.msra.mxu0 %v494_v8  ;;  %457 = vmatpush3.bf16.msra.mxu1 %v512_v19 }
  0x35   :  { %182 = vmatprep.subr.bf16.mxu0 %v495_v9  ;;  %458 = vmatprep.subr.bf16.mxu1 %v513_v20 }
  0x38   :  { %183 = vmatpush1.bf16.msra.mxu0 %v497_v11  ;;  %459 = vmatpush3.bf16.msra.mxu1 %v514_v22 }
  0x39   :  { %184 = vmatprep.subr.bf16.mxu0 %v498_v13  ;;  %460 = vmatprep.subr.bf16.mxu1 %v515_v24 }
  0x3c   :  { %185 = vmatpush1.bf16.msra.mxu0 %v500_v17  ;;  %461 = vmatpush3.bf16.msra.mxu1 %v516_v28 }
  0x3d   :  { %186 = vmatprep.subr.bf16.mxu0 %v501_v18  ;;  %462 = vmatprep.subr.bf16.mxu1 %v517_v30 }
  0x40   :  { %187 = vmatpush1.bf16.msra.mxu0 %v503_v21  ;;  %463 = vmatpush3.bf16.msra.mxu1 %v518_v31 }
  0x41   :  { %188 = vmatprep.subr.bf16.mxu0 %v504_v23  ;;  %464 = vmatprep.subr.bf16.mxu1 %v519_v32 }
  0x44   :  { %189 = vmatpush1.bf16.msra.mxu0 %v506_v25  ;;  %465 = vmatpush3.bf16.msra.mxu1 %v520_v33 }
  0x45   :  { %466 = vmatprep.subr.bf16.mxu1 %v521_v34 }
  0x47   :  { %207 = vmatmul.mubr.bf16.vlgmr.msra.gmra.mxu0 %v65_v29 }
  0x48   :  { %467 = vmatpush3.bf16.msra.mxu1 %v522_v35 }
 0x107   :  { %v208_v41 = vpop.f32.mrf.mxu0 }
 0x108   :  { %v209_v48 = vadd.f32 %v208_v41, %v87_v43 }
 0x109   :  { %v210_v44 = vpop.f32.mrf.mxu0 }
 0x10a   :  { %v211_v46 = vadd.f32 %v210_v44, %v91_v42  ;;  %v217_v54 = vmax.f32 %v209_v48, 0.0 }
 0x10b   :  { %v212_v45 = vpop.f32.mrf.mxu0 }
 0x10c   :  { %v213_v47 = vadd.f32 %v212_v45, %v87_v43  ;;  %v218_v52 = vmax.f32 %v211_v46, 0.0 }
 0x10d   :  { %v214_v49 = vpop.f32.mrf.mxu0 }
 0x10e   :  { %v215_v50 = vadd.f32 %v214_v49, %v91_v42  ;;  %v219_v51 = vmax.f32 %v213_v47, 0.0 }
 0x110   :  { %v220_v53 = vmax.f32 %v215_v50, 0.0  ;;  %v221_v56 = vpack.c.bf16 %v219_v51, %v217_v54 }
 0x112   :  { %v222_v55 = vpack.c.bf16 %v220_v53, %v218_v52 }
 0x114   :  { %390 = vmatprep.mubr.bf16.mxu1 %v222_v55 }
 0x115   :  { %391 = vmatmul.mubr.bf16.vlgmr.msra.gmra.mxu1 %v221_v56 }
 0x1d5   :  { %v468_v57 = vpop.f32.mrf.mxu1 }
 0x1d7   :  { %v469_v59 = vpop.f32.mrf.mxu1 }
 0x1d8   :  { %v470_v60 = vadd.f32 %v469_v59, %v468_v57 }
 0x1d9   :  { %v471_v61 = vpop.f32.mrf.mxu1 }
 0x1da   :  { %v393_v62 = vadd.f32 %v470_v60, %v435_v58 }
 0x1db   :  { %v472_v63 = vpop.f32.mrf.mxu1 }
 0x1dc   :  { %399 = vst [vmem:[#allocation8] sm:$0xff] %v393_v62  ;;  %v473_v0 = vadd.f32 %v472_v63, %v471_v61 }
 0x1de   :  { %v396_v1 = vadd.f32 %v473_v0, %v435_v58 }
 0x1e0   :  { %400 = vst [vmem:[#allocation8 + $0x8] sm:$0xff] %v396_v1 }
 0x1e1   :  { %594 = shalt.err (!%p591_p5)
}
 0x1e2   :  { %412 = dma.vmem_to_hbm [thread:$0]  %s407_s13, 256, %s680_s5, [#allocation4], %s611_s23, %s611_s23, %s612_s24  }
 0x1e3   :  { %607 = dma.done.wait [#allocation4], 256  }
 0x1e4   :  { %608 = vsyncadd [#allocation4], 4294967040 }
 0x1e5   :  { %416 = vsyncpa [#allocation3], 1 }
 0x1e6   :  { %417 = vsyncpa [#allocation6], 1 }
 0x1e7   :  { %418 = vsyncpa [#allocation4], 1 }

</bundles_post_ra>
